<compile_context>
chip_gen: v5e
topology: v5e:2x2
jax: 0.10.0
libtpu: 0.0.40
codegen_flags: <defaults>
</compile_context>

<pallas_src>
import jax
import jax.numpy as jnp
from jax import lax
from jax.experimental import pallas as pl
from jax.experimental.pallas import tpu as pltpu

EPS = 1e-5
_VMEM_BUDGET = 8 * 1024 * 1024          # target live block bytes per grid step
_VMEM_LIMIT = 64 * 1024 * 1024

# ConvTranspose2d(k=4, s=2, p=1) sub-pixel taps:
#   output pixel (2*iy+dy, 2*ix+dx) receives contributions from 2x2 input taps
#   with fixed kernel rows/cols.  Offsets are relative to an input padded by 1.
_TAPS = {0: ((0, 3), (1, 1)),            # (padded start offset, kernel index)
         1: ((1, 2), (2, 0))}


def _pick_tile(n, cap, multiple=1):
    """Largest divisor of n that is <= cap and a multiple of `multiple`."""
    cap = int(max(multiple, min(n, cap)))
    for t in range(cap, multiple - 1, -1):
        if n % t == 0 and t % multiple == 0:
            return t
    return multiple


# ---------------------------------------------------------------------------
# Kernel A: fused nearest-2x upsample + skip-sum + 1x1 conv + folded BN + ReLU.
# ---------------------------------------------------------------------------
def _make_stage1_kernel(n_sk):
    def kernel(*refs):
        xw_ref = refs[0]                               # (1, TH, W2, Cin)
        skip_refs = refs[1:1 + n_sk]                   # each (1, TH, 2, W2, Cin)
        w_ref, s_ref, b_ref, o_ref = refs[1 + n_sk:]
        xw = xw_ref[0]                                 # (TH, W2, Cin)
        w = w_ref[...]                                 # (Cin, Cm)
        s = s_ref[...]                                 # (1, Cm)
        b = b_ref[...]
        th, w2, cin = xw.shape
        cm = w.shape[1]
        for rh in range(2):                            # H-parity of the upsample
            acc = xw
            for skr in skip_refs:
                acc = acc + skr[0, :, rh, :, :]        # (TH, W2, Cin)
            y = jnp.dot(acc.reshape(th * w2, cin), w,
                        preferred_element_type=jnp.float32)
            y = jnp.maximum(y * s + b, 0.0)
            o_ref[0, :, rh, :, :] = y.reshape(th, w2, cm).astype(o_ref.dtype)
    return kernel


def upsample_skip_conv1(x_nhwc, skips_nhwc, w1, s1, b1):
    """x: (N,H,W,Cin), skips: list of (N,2H,2W,Cin) -> (N,2H,2W,Cm)."""
    N, H, W, Cin = x_nhwc.shape
    W2 = 2 * W
    Cm = w1.shape[1]
    # W-duplication of the (small, low-res) x done once in XLA; H-duplication
    # and the skip additions are fused into the kernel.
    xw = jnp.repeat(x_nhwc, 2, axis=2)                          # (N, H, W2, Cin)
    skips5 = [s.reshape(N, H, 2, W2, Cin) for s in skips_nhwc]  # free reshape
    n_sk = len(skips5)

    per_th = 4 * W2 * (Cin * (1 + 2 * n_sk) + 2 * Cm)           # bytes per H row
    cap = max(1, _VMEM_BUDGET // (2 * per_th))
    TH = _pick_tile(H, cap, multiple=1)
    grid = (N, H // TH)

    in_specs = ([pl.BlockSpec((1, TH, W2, Cin), lambda n, j: (n, j, 0, 0))]
                + [pl.BlockSpec((1, TH, 2, W2, Cin),
                                lambda n, j: (n, j, 0, 0, 0))
                   for _ in range(n_sk)]
                + [pl.BlockSpec((Cin, Cm), lambda n, j: (0, 0)),
                   pl.BlockSpec((1, Cm), lambda n, j: (0, 0)),
                   pl.BlockSpec((1, Cm), lambda n, j: (0, 0))])

    out = pl.pallas_call(
        _make_stage1_kernel(n_sk),
        out_shape=jax.ShapeDtypeStruct((N, H, 2, W2, Cm), x_nhwc.dtype),
        grid=grid,
        in_specs=in_specs,
        out_specs=pl.BlockSpec((1, TH, 2, W2, Cm),
                               lambda n, j: (n, j, 0, 0, 0)),
        compiler_params=pltpu.CompilerParams(
            dimension_semantics=("parallel", "parallel"),
            vmem_limit_bytes=_VMEM_LIMIT),
    )(xw, *skips5, w1, s1, b1)
    # (N, H, 2, W2, Cm) is byte-identical to (N, 2H, W2, Cm): free reshape.
    return out.reshape(N, 2 * H, W2, Cm)


# ---------------------------------------------------------------------------
# Kernel B: fused ConvTranspose2d(4,2,1)+BN+ReLU + 1x1 conv+BN+ReLU.
# Band-tiled over H (2-row halo via a second BlockSpec on the same array);
# output written as sub-pixel planes (N, 2, 2, H2, W2, Cout).
# ---------------------------------------------------------------------------
def _make_stage2_kernel(ti, w2, cm, cout):
    def kernel(main_ref, halo_ref, wt_ref, s2_ref, b2_ref,
               w3_ref, s3_ref, b3_ref, o_ref, win_ref):
        # Assemble the (TI+2)-row padded window once into VMEM scratch.
        win_ref[0:ti] = main_ref[0]
        win_ref[ti:ti + 2] = halo_ref[0]
        s2 = s2_ref[...]
        b2 = b2_ref[...]
        w3 = w3_ref[...]
        s3 = s3_ref[...]
        b3 = b3_ref[...]
        for dy in range(2):
            for dx in range(2):
                acc = jnp.zeros((ti * w2, cm), jnp.float32)
                for ry, ky in _TAPS[dy]:
                    for rx, kx in _TAPS[dx]:
                        patch = win_ref[ry:ry + ti, rx:rx + w2, :]
                        acc = acc + jnp.dot(patch.reshape(ti * w2, cm),
                                            wt_ref[ky, kx],
                                            preferred_element_type=jnp.float32)
                y = jnp.maximum(acc * s2 + b2, 0.0)          # tconv + BN + ReLU
                z = jnp.dot(y, w3, preferred_element_type=jnp.float32)
                z = jnp.maximum(z * s3 + b3, 0.0)            # conv3 + BN + ReLU
                o_ref[0, dy, dx] = z.reshape(ti, w2, cout).astype(o_ref.dtype)
    return kernel


def tconv_conv_fused(h, wt, s2, b2, w3, s3, b3):
    """h: (N, H2, W2, Cm) -> sub-pixel planes (N, 2, 2, H2, W2, Cout)."""
    N, H2, W2, Cm = h.shape
    Cout = w3.shape[1]
    hp = jnp.pad(h, ((0, 0), (1, 1), (1, 1), (0, 0)))
    W2p = W2 + 2

    per_ti = 4 * (2 * W2p * Cm + 4 * W2 * Cout)       # bytes per input row
    cap = max(2, _VMEM_BUDGET // (2 * per_ti))
    TI = _pick_tile(H2, min(cap, 64), multiple=2)
    grid = (N, H2 // TI)

    out = pl.pallas_call(
        _make_stage2_kernel(TI, W2, Cm, Cout),
        out_shape=jax.ShapeDtypeStruct((N, 2, 2, H2, W2, Cout), h.dtype),
        grid=grid,
        in_specs=[
            # main rows of the padded input: padded rows [j*TI, j*TI + TI)
            pl.BlockSpec((1, TI, W2p, Cm), lambda n, j: (n, j, 0, 0)),
            # 2-row halo just below the band: padded rows [(j+1)*TI, +2)
            pl.BlockSpec((1, 2, W2p, Cm),
                         lambda n, j: (n, (j + 1) * (TI // 2), 0, 0)),
            pl.BlockSpec((4, 4, Cm, Cm), lambda n, j: (0, 0, 0, 0)),
            pl.BlockSpec((1, Cm), lambda n, j: (0, 0)),
            pl.BlockSpec((1, Cm), lambda n, j: (0, 0)),
            pl.BlockSpec((Cm, Cout), lambda n, j: (0, 0)),
            pl.BlockSpec((1, Cout), lambda n, j: (0, 0)),
            pl.BlockSpec((1, Cout), lambda n, j: (0, 0)),
        ],
        out_specs=pl.BlockSpec((1, 2, 2, TI, W2, Cout),
                               lambda n, j: (n, 0, 0, j, 0, 0)),
        scratch_shapes=[pltpu.VMEM((TI + 2, W2p, Cm), jnp.float32)],
        compiler_params=pltpu.CompilerParams(
            dimension_semantics=("parallel", "parallel"),
            vmem_limit_bytes=_VMEM_LIMIT),
    )(hp, hp, wt, s2, b2, w3, s3, b3)
    return out


# ---------------------------------------------------------------------------
# Full DecoderBlock forward (wrapper; takes raw PyTorch-shaped params).
# ---------------------------------------------------------------------------
def decoder_block_forward(x_nchw, skips_nchw, p):
    """x_nchw: (N, Cin, H, W); skips: list of (N, Cin, 2H, 2W) or None.
    Returns (N, Cout, 4H, 4W)."""

    # Fold inference-mode BatchNorm (+ optional conv bias) into scale/bias.
    # TODO(synk): training-mode BatchNorm (batch statistics) not implemented;
    # eval-mode running-stat affine is used.
    def fold(gamma, beta, mean, var, conv_bias=None):
        s = gamma / jnp.sqrt(var + EPS)
        b = beta - mean * s
        if conv_bias is not None:
            b = b + conv_bias * s
        return s[None, :], b[None, :]

    w1 = jnp.transpose(p['conv1_w'])                  # (Cin, Cm)
    s1, b1 = fold(p['bn1_g'], p['bn1_b'], p['bn1_m'], p['bn1_v'])
    wt = jnp.transpose(p['tconv_w'], (2, 3, 0, 1))    # (kh, kw, Cm_in, Cm_out)
    s2, b2 = fold(p['bn2_g'], p['bn2_b'], p['bn2_m'], p['bn2_v'], p['tconv_b'])
    w3 = jnp.transpose(p['conv3_w'])                  # (Cm, Cout)
    s3, b3 = fold(p['bn3_g'], p['bn3_b'], p['bn3_m'], p['bn3_v'])

    x = jnp.transpose(x_nchw, (0, 2, 3, 1))           # NHWC (layout glue)
    N, H, W, Cin = x.shape
    assert W % 4 == 0, "kernels require W % 4 == 0 (sublane-aligned reshapes)"
    assert wt.shape[2] == wt.shape[3] == w1.shape[1], "tconv must be Cm -> Cm"

    skips = ([] if skips_nchw is None
             else [jnp.transpose(s, (0, 2, 3, 1)) for s in skips_nchw])

    h = upsample_skip_conv1(x, skips, w1, s1, b1)          # (N, 2H, 2W, Cm)
    planes = tconv_conv_fused(h, wt, s2, b2, w3, s3, b3)   # (N, 2, 2, 2H, 2W, Cout)

    # Single boundary transpose folds both the NCHW layout change and the
    # sub-pixel (dy, dx) interleave: planes[n,dy,dx,iy,ix,c] -> (n,c,2iy+dy,2ix+dx)
    Cout = w3.shape[1]
    out = jnp.transpose(planes, (0, 5, 3, 1, 4, 2)).reshape(N, Cout, 4 * H, 4 * W)
    return out


# ---------------------------------------------------------------------------
# Pure-JAX reference (independent formulation) for correctness checking.
# ---------------------------------------------------------------------------
def _bn_ref(h, g, b, m, v):
    return (g[None, :, None, None] * (h - m[None, :, None, None])
            / jnp.sqrt(v[None, :, None, None] + EPS) + b[None, :, None, None])


def reference_decoder_block(x, skips, p):
    hp = lax.Precision.HIGHEST
    x = jnp.repeat(jnp.repeat(x, 2, axis=2), 2, axis=3)
    if skips is not None:
        for s in skips:
            x = x + s
    h = jnp.einsum('nchw,oc->nohw', x, p['conv1_w'], precision=hp)
    h = jax.nn.relu(_bn_ref(h, p['bn1_g'], p['bn1_b'], p['bn1_m'], p['bn1_v']))
    # ConvTranspose2d(k=4,s=2,p=1) == dilate-by-2 + pad-(k-1-p) + conv(flipped kernel)
    k = jnp.transpose(jnp.flip(p['tconv_w'], axis=(2, 3)), (2, 3, 0, 1))  # HWIO
    h = lax.conv_general_dilated(h, k, window_strides=(1, 1),
                                 padding=((2, 2), (2, 2)), lhs_dilation=(2, 2),
                                 dimension_numbers=('NCHW', 'HWIO', 'NCHW'),
                                 precision=hp)
    h = h + p['tconv_b'][None, :, None, None]
    h = jax.nn.relu(_bn_ref(h, p['bn2_g'], p['bn2_b'], p['bn2_m'], p['bn2_v']))
    out = jnp.einsum('nchw,oc->nohw', h, p['conv3_w'], precision=hp)
    out = jax.nn.relu(_bn_ref(out, p['bn3_g'], p['bn3_b'], p['bn3_m'], p['bn3_v']))
    return out


def make_params(key, in_channels, out_channels):
    cm = in_channels // 4
    ks = jax.random.split(key, 16)

    def n(k, shape, s=0.2):
        return s * jax.random.normal(k, shape, jnp.float32)

    return dict(
        conv1_w=n(ks[0], (cm, in_channels)),                # 1x1 conv, (out, in)
        bn1_g=1.0 + n(ks[1], (cm,), 0.1), bn1_b=n(ks[2], (cm,), 0.1),
        bn1_m=n(ks[3], (cm,), 0.1), bn1_v=0.5 + jnp.abs(n(ks[4], (cm,), 0.5)),
        tconv_w=n(ks[5], (cm, cm, 4, 4)),                   # (Cin, Cout, kH, kW)
        tconv_b=n(ks[6], (cm,), 0.1),
        bn2_g=1.0 + n(ks[7], (cm,), 0.1), bn2_b=n(ks[8], (cm,), 0.1),
        bn2_m=n(ks[9], (cm,), 0.1), bn2_v=0.5 + jnp.abs(n(ks[10], (cm,), 0.5)),
        conv3_w=n(ks[11], (out_channels, cm)),              # 1x1 conv, (out, in)
        bn3_g=1.0 + n(ks[12], (out_channels,), 0.1),
        bn3_b=n(ks[13], (out_channels,), 0.1),
        bn3_m=n(ks[14], (out_channels,), 0.1),
        bn3_v=0.5 + jnp.abs(n(ks[15], (out_channels,), 0.5)),
    )


if __name__ == "__main__":
    key = jax.random.PRNGKey(0)
    k_x, k_s1, k_s2, k_p = jax.random.split(key, 4)

    N, Cin, H, W = 2, 16, 8, 8
    Cout = 8
    x = jax.random.normal(k_x, (N, Cin, H, W), jnp.float32)
    skips = [0.5 * jax.random.normal(k_s1, (N, Cin, 2 * H, 2 * W), jnp.float32),
             0.5 * jax.random.normal(k_s2, (N, Cin, 2 * H, 2 * W), jnp.float32)]
    params = make_params(k_p, Cin, Cout)

    out = decoder_block_forward(x, skips, params)
    out = jax.block_until_ready(out)

    ref = reference_decoder_block(x, skips, params)
    assert out.shape == (N, Cout, 4 * H, 4 * W), out.shape
    err = float(jnp.max(jnp.abs(out - ref)))
    if not jnp.allclose(out, ref, atol=1e-3, rtol=1e-3):
        raise AssertionError(f"mismatch vs reference, max abs err = {err}")
    print("KERNEL_OK")
</pallas_src>

<mosaic_0001>
module attributes {stable_mosaic.version = 11 : i64} {
  func.func @kernel(%arg0: i32, %arg1: i32, %arg2: memref<1x8x16x16xf32, #tpu.memory_space<vmem>>, %arg3: memref<1x8x2x16x16xf32, #tpu.memory_space<vmem>>, %arg4: memref<1x8x2x16x16xf32, #tpu.memory_space<vmem>>, %arg5: memref<16x4xf32, #tpu.memory_space<vmem>>, %arg6: memref<1x4xf32, #tpu.memory_space<vmem>>, %arg7: memref<1x4xf32, #tpu.memory_space<vmem>>, %arg8: memref<1x8x2x16x4xf32, #tpu.memory_space<vmem>>) attributes {dimension_semantics = [#tpu.dimension_semantics<parallel>, #tpu.dimension_semantics<parallel>], iteration_bounds = array<i64: 2, 1>, scalar_prefetch = 0 : i64, scratch_operands = 0 : i64, tpu.core_type = #tpu.core_type<tc>, window_params = [{transform_indices = @transform_0, window_bounds = array<i64: 1, 8, 16, 16>}, {transform_indices = @transform_1, window_bounds = array<i64: 1, 8, 2, 16, 16>}, {transform_indices = @transform_2, window_bounds = array<i64: 1, 8, 2, 16, 16>}, {pipeline_mode = #tpu.pipeline_mode<synchronous>, transform_indices = @transform_3, window_bounds = array<i64: 16, 4>}, {pipeline_mode = #tpu.pipeline_mode<synchronous>, transform_indices = @transform_4, window_bounds = array<i64: 1, 4>}, {pipeline_mode = #tpu.pipeline_mode<synchronous>, transform_indices = @transform_5, window_bounds = array<i64: 1, 4>}, {transform_indices = @transform_6, window_bounds = array<i64: 1, 8, 2, 16, 4>}]} {
    %c0 = arith.constant 0 : index
    %c0_0 = arith.constant 0 : index
    %c0_1 = arith.constant 0 : index
    %c0_2 = arith.constant 0 : index
    %0 = vector.load %arg2[%c0, %c0_0, %c0_1, %c0_2] : memref<1x8x16x16xf32, #tpu.memory_space<vmem>>, vector<1x8x16x16xf32>
    %1 = vector.shape_cast %0 : vector<1x8x16x16xf32> to vector<8x16x16xf32>
    %c0_3 = arith.constant 0 : index
    %c0_4 = arith.constant 0 : index
    %2 = vector.load %arg5[%c0_3, %c0_4] : memref<16x4xf32, #tpu.memory_space<vmem>>, vector<16x4xf32>
    %c0_5 = arith.constant 0 : index
    %c0_6 = arith.constant 0 : index
    %3 = vector.load %arg6[%c0_5, %c0_6] : memref<1x4xf32, #tpu.memory_space<vmem>>, vector<1x4xf32>
    %c0_7 = arith.constant 0 : index
    %c0_8 = arith.constant 0 : index
    %4 = vector.load %arg7[%c0_7, %c0_8] : memref<1x4xf32, #tpu.memory_space<vmem>>, vector<1x4xf32>
    %c0_9 = arith.constant 0 : index
    %c0_10 = arith.constant 0 : index
    %c0_11 = arith.constant 0 : index
    %c0_12 = arith.constant 0 : index
    %c0_13 = arith.constant 0 : index
    %5 = vector.load %arg3[%c0_9, %c0_10, %c0_11, %c0_12, %c0_13] : memref<1x8x2x16x16xf32, #tpu.memory_space<vmem>>, vector<1x8x1x16x16xf32>
    %6 = vector.shape_cast %5 : vector<1x8x1x16x16xf32> to vector<8x16x16xf32>
    %7 = arith.addf %1, %6 : vector<8x16x16xf32>
    %c0_14 = arith.constant 0 : index
    %c0_15 = arith.constant 0 : index
    %c0_16 = arith.constant 0 : index
    %c0_17 = arith.constant 0 : index
    %c0_18 = arith.constant 0 : index
    %8 = vector.load %arg4[%c0_14, %c0_15, %c0_16, %c0_17, %c0_18] : memref<1x8x2x16x16xf32, #tpu.memory_space<vmem>>, vector<1x8x1x16x16xf32>
    %9 = vector.shape_cast %8 : vector<1x8x1x16x16xf32> to vector<8x16x16xf32>
    %10 = arith.addf %7, %9 : vector<8x16x16xf32>
    %11 = vector.shape_cast %10 : vector<8x16x16xf32> to vector<128x16xf32>
    %cst = arith.constant dense<0.000000e+00> : vector<128x4xf32>
    %12 = tpu.matmul %11, %2, %cst {dimension_numbers = #tpu.dot_dimension_numbers<[1], [0], [0], [1], [0, 0, 1, 1], [], []>} : vector<128x16xf32>, vector<16x4xf32>, vector<128x4xf32> -> vector<128x4xf32>
    %13 = vector.broadcast %3 : vector<1x4xf32> to vector<128x4xf32>
    %14 = arith.mulf %12, %13 : vector<128x4xf32>
    %15 = vector.broadcast %4 : vector<1x4xf32> to vector<128x4xf32>
    %16 = arith.addf %14, %15 : vector<128x4xf32>
    %cst_19 = arith.constant 0.000000e+00 : f32
    %17 = vector.broadcast %cst_19 : f32 to vector<128x4xf32>
    %18 = arith.maximumf %16, %17 : vector<128x4xf32>
    %19 = vector.shape_cast %18 : vector<128x4xf32> to vector<8x16x4xf32>
    %c0_20 = arith.constant 0 : index
    %c0_21 = arith.constant 0 : index
    %c0_22 = arith.constant 0 : index
    %c0_23 = arith.constant 0 : index
    %c0_24 = arith.constant 0 : index
    %20 = vector.load %arg8[%c0_20, %c0_21, %c0_22, %c0_23, %c0_24] : memref<1x8x2x16x4xf32, #tpu.memory_space<vmem>>, vector<1x8x1x16x4xf32>
    %21 = vector.shape_cast %20 : vector<1x8x1x16x4xf32> to vector<8x16x4xf32>
    %22 = vector.shape_cast %19 : vector<8x16x4xf32> to vector<1x8x1x16x4xf32>
    tpu.vector_store %arg8[%c0_20, %c0_21, %c0_22, %c0_23, %c0_24], %22 {strides = array<i32>} : memref<1x8x2x16x4xf32, #tpu.memory_space<vmem>>, vector<1x8x1x16x4xf32>,
    %c0_25 = arith.constant 0 : index
    %c0_26 = arith.constant 0 : index
    %c1 = arith.constant 1 : index
    %c0_27 = arith.constant 0 : index
    %c0_28 = arith.constant 0 : index
    %23 = vector.load %arg3[%c0_25, %c0_26, %c1, %c0_27, %c0_28] : memref<1x8x2x16x16xf32, #tpu.memory_space<vmem>>, vector<1x8x1x16x16xf32>
    %24 = vector.shape_cast %23 : vector<1x8x1x16x16xf32> to vector<8x16x16xf32>
    %25 = arith.addf %1, %24 : vector<8x16x16xf32>
    %c0_29 = arith.constant 0 : index
    %c0_30 = arith.constant 0 : index
    %c1_31 = arith.constant 1 : index
    %c0_32 = arith.constant 0 : index
    %c0_33 = arith.constant 0 : index
    %26 = vector.load %arg4[%c0_29, %c0_30, %c1_31, %c0_32, %c0_33] : memref<1x8x2x16x16xf32, #tpu.memory_space<vmem>>, vector<1x8x1x16x16xf32>
    %27 = vector.shape_cast %26 : vector<1x8x1x16x16xf32> to vector<8x16x16xf32>
    %28 = arith.addf %25, %27 : vector<8x16x16xf32>
    %29 = vector.shape_cast %28 : vector<8x16x16xf32> to vector<128x16xf32>
    %cst_34 = arith.constant dense<0.000000e+00> : vector<128x4xf32>
    %30 = tpu.matmul %29, %2, %cst_34 {dimension_numbers = #tpu.dot_dimension_numbers<[1], [0], [0], [1], [0, 0, 1, 1], [], []>} : vector<128x16xf32>, vector<16x4xf32>, vector<128x4xf32> -> vector<128x4xf32>
    %31 = vector.broadcast %3 : vector<1x4xf32> to vector<128x4xf32>
    %32 = arith.mulf %30, %31 : vector<128x4xf32>
    %33 = vector.broadcast %4 : vector<1x4xf32> to vector<128x4xf32>
    %34 = arith.addf %32, %33 : vector<128x4xf32>
    %cst_35 = arith.constant 0.000000e+00 : f32
    %35 = vector.broadcast %cst_35 : f32 to vector<128x4xf32>
    %36 = arith.maximumf %34, %35 : vector<128x4xf32>
    %37 = vector.shape_cast %36 : vector<128x4xf32> to vector<8x16x4xf32>
    %c0_36 = arith.constant 0 : index
    %c0_37 = arith.constant 0 : index
    %c1_38 = arith.constant 1 : index
    %c0_39 = arith.constant 0 : index
    %c0_40 = arith.constant 0 : index
    %38 = vector.load %arg8[%c0_36, %c0_37, %c1_38, %c0_39, %c0_40] : memref<1x8x2x16x4xf32, #tpu.memory_space<vmem>>, vector<1x8x1x16x4xf32>
    %39 = vector.shape_cast %38 : vector<1x8x1x16x4xf32> to vector<8x16x4xf32>
    %40 = vector.shape_cast %37 : vector<8x16x4xf32> to vector<1x8x1x16x4xf32>
    tpu.vector_store %arg8[%c0_36, %c0_37, %c1_38, %c0_39, %c0_40], %40 {strides = array<i32>} : memref<1x8x2x16x4xf32, #tpu.memory_space<vmem>>, vector<1x8x1x16x4xf32>,
    return
  }
  func.func @transform_0(%arg0: i32, %arg1: i32) -> (i32, i32, i32, i32) {
    %c0_i32 = arith.constant 0 : i32
    %c0_i32_0 = arith.constant 0 : i32
    %c0_i32_1 = arith.constant 0 : i32
    return %arg0, %arg1, %c0_i32, %c0_i32_0 : i32, i32, i32, i32
  }
  func.func @transform_1(%arg0: i32, %arg1: i32) -> (i32, i32, i32, i32, i32) {
    %c0_i32 = arith.constant 0 : i32
    %c0_i32_0 = arith.constant 0 : i32
    %c0_i32_1 = arith.constant 0 : i32
    %c0_i32_2 = arith.constant 0 : i32
    return %arg0, %arg1, %c0_i32, %c0_i32_0, %c0_i32_1 : i32, i32, i32, i32, i32
  }
  func.func @transform_2(%arg0: i32, %arg1: i32) -> (i32, i32, i32, i32, i32) {
    %c0_i32 = arith.constant 0 : i32
    %c0_i32_0 = arith.constant 0 : i32
    %c0_i32_1 = arith.constant 0 : i32
    %c0_i32_2 = arith.constant 0 : i32
    return %arg0, %arg1, %c0_i32, %c0_i32_0, %c0_i32_1 : i32, i32, i32, i32, i32
  }
  func.func @transform_3(%arg0: i32, %arg1: i32) -> (i32, i32) {
    %c0_i32 = arith.constant 0 : i32
    %c0_i32_0 = arith.constant 0 : i32
    %c0_i32_1 = arith.constant 0 : i32
    return %c0_i32, %c0_i32_0 : i32, i32
  }
  func.func @transform_4(%arg0: i32, %arg1: i32) -> (i32, i32) {
    %c0_i32 = arith.constant 0 : i32
    %c0_i32_0 = arith.constant 0 : i32
    %c0_i32_1 = arith.constant 0 : i32
    return %c0_i32, %c0_i32_0 : i32, i32
  }
  func.func @transform_5(%arg0: i32, %arg1: i32) -> (i32, i32) {
    %c0_i32 = arith.constant 0 : i32
    %c0_i32_0 = arith.constant 0 : i32
    %c0_i32_1 = arith.constant 0 : i32
    return %c0_i32, %c0_i32_0 : i32, i32
  }
  func.func @transform_6(%arg0: i32, %arg1: i32) -> (i32, i32, i32, i32, i32) {
    %c0_i32 = arith.constant 0 : i32
    %c0_i32_0 = arith.constant 0 : i32
    %c0_i32_1 = arith.constant 0 : i32
    %c0_i32_2 = arith.constant 0 : i32
    return %arg0, %arg1, %c0_i32, %c0_i32_0, %c0_i32_1 : i32, i32, i32, i32, i32
  }
}

</mosaic_0001>

<bundles_post_ra>
// kernel: tpu_custom_call.1
= control target key start
LH: loop header
LB: loop body
LE: loop exit
PB: predicated region body
PF: predicated region fallthrough
CT: control target
= control target key end

     0   :  { %s1799_s0 = inlined_call_operand.hbm [shape: f32[2,8,16,16], index: 0, kind: input, shape index: {}]   ;;  %s1800_s1 = inlined_call_operand.hbm [shape: f32[2,8,2,16,16], index: 1, kind: input, shape index: {}]   ;;  %s1801_s2 = inlined_call_operand.hbm [shape: f32[2,8,2,16,16], index: 2, kind: input, shape index: {}]   ;;  %s1802_s3 = inlined_call_operand.vmem [shape: f32[16,4], index: 3, kind: input, shape index: {}]   ;;  %s1803_s4 = inlined_call_operand.vmem [shape: f32[1,4], index: 4, kind: input, shape index: {}]   ;;  %s1804_s5 = inlined_call_operand.vmem [shape: f32[1,4], index: 5, kind: input, shape index: {}]   ;;  %s1805_s6 = inlined_call_operand.vmem [shape: f32[2,8,2,16,4], index: 6, kind: output, shape index: {}]  }
   0x1   :  { %1808 = sst [smem:[#allocation11_spill]] %s1800_s1 }
   0x2   :  { %1809 = sst [smem:[#allocation12_spill]] %s1801_s2 }
   0x3   :  { %11 = vsyncpa [#allocation3], 0 }
   0x4   :  { %13 = vsyncpa [#allocation3 + $0x1], 0 }
   0x5   :  { %14 = vsyncpa [#allocation5], 0 }
   0x6   :  { %16 = vsyncpa [#allocation5 + $0x1], 0  ;;  %s1422_s21 = smov 0   ;;  %s1424_s22 = smov 0  }
   0x7   :  { %s1426_s23 = smov 0   ;;  %s1428_s24 = smov 0  }
   0x8   :  { %s1430_s25 = smov 0   ;;  %s1432_s26 = smov 0  }
   0x9 LB: > { %s1806_s27 = sadd.s32 4294967295, %s1383_s26   ;;  %s34_s28 = sadd.s32 1, %s1379_s25  ;;  %s1383_s26 = sphi %s1432_s26, %s22_s26   ;;  %s1379_s25 = sphi %s1430_s25, %s1823_s25   ;;  %s1375_s24 = sphi %s1428_s24, %s1822_s24   ;;  %s1371_s23 = sphi %s1426_s23, %s1821_s23   ;;  %s1367_s22 = sphi %s1424_s22, %s1820_s22   ;;  %s1363_s21 = sphi %s1422_s21, %s1819_s21  }
   0xa   : > { %p36_p0 = scmp.ge.s32.totalorder %s34_s28, 2  ;;  %s43_s29 = sadd.s32 1, %s1371_s23 }
   0xb   : > { %p50_p1 = scmp.ne.s32.totalorder %s1371_s23, %s1367_s22  ;;  %p51_p2 = scmp.eq.s32.totalorder %s1383_s26, 0 }
   0xc   : > { %s1825_s28 = smov (%p36_p0, %s34_s28), 0  ;;  %p56_p4 = scmp.ne.s32.totalorder %s1367_s22, %s1363_s21 }
   0xd   : > { %1810 = sst [smem:[#allocation9_spill]] %s1825_s28  ;;  %p52_p3 = por %p51_p2, %p50_p1 }
   0xe   : > { %s38_s30 = ssub.s32 %s1379_s25, %s1825_s28  ;;  %p57_p5 = scmp.eq.s32.totalorder %s1806_s27, 0 }
   0xf   : > { %p41_p6 = scmp.eq.s32.totalorder %s38_s30, 0  ;;  %p1186_p8 = scmp.lt.s32.totalorder %s1383_s26, 2 }
  0x10   : > { %p1463_p7 = por %p57_p5, %p56_p4  ;;  %s1472_s9 = sand.u32 1, %s1371_s23  }
  0x11   : > { %s1469_s8 = scalar_select %p41_p6, %s1371_s23, %s43_s29  }
  0x12   : > { %p1474_p9 = pnand %p1186_p8, %p52_p3  ;;  %s261_s11 = sand.u32 1, %s1383_s26  }
  0x13   : > { %1812 = sst [smem:[#allocation10_spill]] %s1469_s8  ;;  %s1068_s12 = sshll.u32 %s1472_s9, 8 }
  0x14   : > { %s1163_s13 = sshll.u32 %s1379_s25, 8  ;;  %s1814_s1 = sld [smem:[#allocation11_spill]] }
  0x15   : > { %s265_s17 = scalar_lea.vmem [#allocation4], %s1068_s12  ;;  %s262_s20 = scalar_lea.sflag [#allocation5], %s261_s11 }
  0x16   : > { %s276_s18 = sshll.u32 %s265_s17, 4  ;;  %s1385_s21 = smov 128   ;;  %s277_s18 = int_to_ptr.vmem [resolvable:$true] %s276_s18 }
  0x17   : > { %s1386_s29 = smov 8   ;;  %s1815_s2 = sld [smem:[#allocation12_spill]] }
  0x18   : > { %s290_s14 = scalar_lea.vmem [#allocation6], %s1068_s12  ;;  %p1074_p10 = scmp.ge.s32.totalorder %s1383_s26, 1 }
  0x19   : > { %s301_s15 = sshll.u32 %s290_s14, 4  ;;  %p309_p11 = scmp.lt.s32.totalorder %s1383_s26, 3  ;;  %s302_s15 = int_to_ptr.vmem [resolvable:$true] %s301_s15 }
  0x1a   : > { %s273_s16 = scalar_lea.hbm %s1814_s1, %s1163_s13  ;;  %s1065_s11 = sshll.u32 %s1472_s9, 7 }
  0x1b   : > { %s274_s19 = sshll.u32 %s273_s16, 4  ;;  %p310_p12 = pnand %p1074_p10, %p309_p11  ;;  %s275_s19 = int_to_ptr.hbm [resolvable:$true] %s274_s19 }
  0x1c   : > { %1182 = dma.hbm_to_vmem [thread:$0]  (!%p1474_p9), %s275_s19, 4096, %s277_s18, %s262_s20, %s1385_s21, %s1385_s21, %s1386_s29  }
  0x1d   : > { %s298_s28 = scalar_lea.hbm %s1815_s2, %s1163_s13  ;;  %s1162_s16 = sshll.u32 %s1379_s25, 7 }
  0x1e   : > { %s299_s1 = sshll.u32 %s298_s28, 4  ;;  %s248_s18 = scalar_lea.hbm %s1799_s0, %s1162_s16  ;;  %s300_s1 = int_to_ptr.hbm [resolvable:$true] %s299_s1 }
  0x1f   : > { %s240_s19 = scalar_lea.vmem [#allocation2], %s1065_s11  ;;  %s249_s13 = sshll.u32 %s248_s18, 4  ;;  %s250_s13 = int_to_ptr.hbm [resolvable:$true] %s249_s13 }
  0x20   : > { %s251_s27 = sshll.u32 %s240_s19, 4  ;;  %s237_s12 = scalar_lea.sflag [#allocation3], %s1472_s9  ;;  %s252_s27 = int_to_ptr.vmem [resolvable:$true] %s251_s27 }
  0x21   : > { %1179 = dma.hbm_to_vmem [thread:$0]  (!%p1474_p9), %s250_s13, 2048, %s252_s27, %s237_s12, %s1385_s21, %s1385_s21, %s1386_s29  }
  0x22   : > { %1185 = dma.hbm_to_vmem [thread:$0]  (!%p1474_p9), %s300_s1, 4096, %s302_s15, %s262_s20, %s1385_s21, %s1385_s21, %s1386_s29  }
  0x23   : > { %313 = sbr.rel (%p310_p12) target bundleno = 247 (0xf7), region = 44  ;;  %s315_s28 = sand.u32 (!%p310_p12), 1, %s1367_s22  }
  0x24   : > { %s1075_s30 = sshll.u32 (!%p310_p12), %s315_s28, 7  ;;  %s316_s14 = scalar_lea.sflag (!%p310_p12), [#allocation3], %s315_s28 }
  0x25   : > { %s1502_s2 = scalar_lea.vmem (!%p310_p12), [#allocation2], %s1075_s30 }
  0x28   : > { %1354 = dma.done.wait (%p1463_p7), %s316_s14, 2048  }
  0x29   : > { %1356 = vsyncadd (%p1463_p7), %s316_s14, 4294965248  ;;  %s1816_s8 = sadd.s32 4294967295, %s1383_s26   ;;  %s1076_s11 = sshll.u32 %s315_s28, 8 }
  0x2a   : > { %s325_s9 = sand.u32 1, %s1816_s8   ;;  %s1510_s1 = scalar_lea.vmem [#allocation4], %s1076_s11 }
  0x2b   : > { %s326_s10 = scalar_lea.sflag [#allocation5], %s325_s9 }
  0x2c   : > { %1358 = dma.done.wait (%p1463_p7), %s326_s10, 8192  }
  0x2d   : > { %1360 = vsyncadd (%p1463_p7), %s326_s10, 4294959104  ;;  %v415_v0 = vld [vmem:[%s1802_s3 + $0x8] sm:$0xff]  ;;  %v414_v1 = vld [vmem:[%s1802_s3] sm:$0xff]  ;;  %s1524_s7 = scalar_lea.vmem [#allocation6], %s1076_s11  ;;  %vm482_vm0 = vcmask 130048   ;;  %p388_p13 = scmp.lt.s32.totalorder %s1375_s24, 1 }
  0x2e   : > { %v406_v2 = vld [vmem:[%s1502_s2 + $0x40] sm:$0xff]  ;;  %1166 = vmatpush.msra.mxu2 %v415_v0  ;;  %1168 = vmatpush.msra.mxu3 %v415_v0  ;;  %v1104_v5 = vld [vmem:[%s1510_s1 + $0x90] sm:$0xff]  ;;  %v407_v18 = vld [vmem:[%s1502_s2 + $0x48] sm:$0xff]  ;;  %vm650_vm1 = vcmask 31744  }
  0x2f   : > { %v426_v3 = vld [vmem:[%s1510_s1 + $0x80] sm:$0xff]  ;;  %v692_v7 = vadd.f32 %v1104_v5, %v406_v2  ;;  %v1120_v8 = vld [vmem:[%s1524_s7 + $0x90] sm:$0xff]  ;;  %545 = vmatpush.msra.mxu0 %v415_v0  ;;  %795 = vmatpush.msra.mxu1 %v415_v0  ;;  %v427_v19 = vld [vmem:[%s1510_s1 + $0x88] sm:$0xff]  ;;  %s1827_s24 = smov (!%p388_p13, %s1375_s24), 1 }
  0x30   : > { %v458_v4 = vld [vmem:[%s1524_s7 + $0x80] sm:$0xff]  ;;  %v442_v6 = vadd.f32 %v426_v3, %v406_v2  ;;  %1167 = vmatpush.msra.mxu2 %v414_v1  ;;  %1169 = vmatpush.msra.mxu3 %v414_v1  ;;  %v1096_v13 = vld [vmem:[%s1510_s1 + $0x10] sm:$0xff]  ;;  %v1105_v21 = vld [vmem:[%s1510_s1 + $0x98] sm:$0xff]  ;;  %v443_v24 = vadd.f32 %v427_v19, %v407_v18  ;;  %s1165_s19 = sshll.u32 %s1827_s24, 8 }
  0x31   : > { %v398_v9 = vld [vmem:[%s1502_s2] sm:$0xff]  ;;  %v1112_v14 = vld [vmem:[%s1524_s7 + $0x10] sm:$0xff]  ;;  %v725_v16 = vadd.f32 %v1120_v8, %v692_v7  ;;  %546 = vmatpush.msra.mxu0 %v414_v1  ;;  %796 = vmatpush.msra.mxu1 %v414_v1  ;;  %v399_v22 = vld [vmem:[%s1502_s2 + $0x8] sm:$0xff]  ;;  %v693_v25 = vadd.f32 %v1105_v21, %v407_v18  ;;  %s1654_s12 = scalar_lea.vmem %s1805_s6, %s1165_s19 }
  0x32   : > { %v418_v10 = vld [vmem:[%s1510_s1] sm:$0xff]  ;;  %v474_v15 = vadd.f32 %v458_v4, %v442_v6  ;;  %v684_v17 = vadd.f32 %v1096_v13, %v398_v9  ;;  %v419_v26 = vld [vmem:[%s1510_s1 + $0x8] sm:$0xff]  ;;  %v1097_v27 = vld [vmem:[%s1510_s1 + $0x18] sm:$0xff] }
  0x33   : > { %v434_v11 = vadd.f32 %v418_v10, %v398_v9  ;;  %v450_v12 = vld [vmem:[%s1524_s7] sm:$0xff]  ;;  %1136 = vmatmul.msk.f32.vlgmr.msra.gmra.mxu3 %vm482_vm0, %v725_v16  ;;  %v459_v28 = vld [vmem:[%s1524_s7 + $0x88] sm:$0xff]  ;;  %v1121_v29 = vld [vmem:[%s1524_s7 + $0x98] sm:$0xff]  ;;  %v435_v30 = vadd.f32 %v419_v26, %v399_v22  ;;  %v685_v32 = vadd.f32 %v1097_v27, %v399_v22 }
  0x34   : > { %1088 = vmatmul.msk.f32.vlgmr.msra.gmra.mxu2 %vm482_vm0, %v474_v15  ;;  %v717_v23 = vadd.f32 %v1112_v14, %v684_v17  ;;  %v451_v31 = vld [vmem:[%s1524_s7 + $0x8] sm:$0xff]  ;;  %v1113_v33 = vld [vmem:[%s1524_s7 + $0x18] sm:$0xff]  ;;  %v475_v34 = vadd.f32 %v459_v28, %v443_v24  ;;  %v726_v35 = vadd.f32 %v1121_v29, %v693_v25  ;;  %v408_v37 = vld [vmem:[%s1502_s2 + $0x50] sm:$0xff] }
  0x35   : > { %v466_v20 = vadd.f32 %v450_v12, %v434_v11  ;;  %v467_v36 = vadd.f32 %v451_v31, %v435_v30  ;;  %v428_v38 = vld [vmem:[%s1510_s1 + $0xa0] sm:$0xff]  ;;  %v1106_v39 = vld [vmem:[%s1510_s1 + $0xb0] sm:$0xff]  ;;  %v718_v40 = vadd.f32 %v1113_v33, %v685_v32  ;;  %v409_v55 = vld [vmem:[%s1502_s2 + $0x58] sm:$0xff] }
  0x36   : > { %1128 = vmatmul.msk.f32.vlgmr.msra.gmra.mxu1 %vm482_vm0, %v717_v23  ;;  %v400_v41 = vld [vmem:[%s1502_s2 + $0x10] sm:$0xff]  ;;  %v420_v42 = vld [vmem:[%s1510_s1 + $0x20] sm:$0xff]  ;;  %v444_v44 = vadd.f32 %v428_v38, %v408_v37  ;;  %v694_v45 = vadd.f32 %v1106_v39, %v408_v37  ;;  %v429_v56 = vld [vmem:[%s1510_s1 + $0xa8] sm:$0xff] }
  0x37   : > { %1080 = vmatmul.msk.f32.vlgmr.msra.gmra.mxu0 %vm482_vm0, %v466_v20  ;;  %v1098_v43 = vld [vmem:[%s1510_s1 + $0x30] sm:$0xff]  ;;  %v460_v46 = vld [vmem:[%s1524_s7 + $0xa0] sm:$0xff]  ;;  %v436_v48 = vadd.f32 %v420_v42, %v400_v41  ;;  %v1107_v57 = vld [vmem:[%s1510_s1 + $0xb8] sm:$0xff]  ;;  %v445_v62 = vadd.f32 %v429_v56, %v409_v55 }
  0x38   : > { %v1122_v47 = vld [vmem:[%s1524_s7 + $0xb0] sm:$0xff]  ;;  %v452_v49 = vld [vmem:[%s1524_s7 + $0x20] sm:$0xff]  ;;  %v686_v50 = vadd.f32 %v1098_v43, %v400_v41  ;;  %v476_v52 = vadd.f32 %v460_v46, %v444_v44  ;;  %v401_v59 = vld [vmem:[%s1502_s2 + $0x18] sm:$0xff]  ;;  %v695_v63 = vadd.f32 %v1107_v57, %v409_v55 }
  0x39   : > { %v1114_v51 = vld [vmem:[%s1524_s7 + $0x30] sm:$0xff]  ;;  %v727_v53 = vadd.f32 %v1122_v47, %v694_v45  ;;  %v468_v54 = vadd.f32 %v452_v49, %v436_v48  ;;  %v421_v60 = vld [vmem:[%s1510_s1 + $0x28] sm:$0xff]  ;;  %v1099_v61 = vld [vmem:[%s1510_s1 + $0x38] sm:$0xff] }
  0x3a   : > { %v719_v58 = vadd.f32 %v1114_v51, %v686_v50  ;;  %v461_v0 = vld [vmem:[%s1524_s7 + $0xa8] sm:$0xff]  ;;  %v1123_v1 = vld [vmem:[%s1524_s7 + $0xb8] sm:$0xff]  ;;  %v437_v2 = vadd.f32 %v421_v60, %v401_v59  ;;  %v687_v4 = vadd.f32 %v1099_v61, %v401_v59  ;;  %v410_v9 = vld [vmem:[%s1502_s2 + $0x60] sm:$0xff] }
  0x3b   : > { %1137 = vmatmul.msk.f32.gmra.mxu3 %vm482_vm0, %v726_v35  ;;  %v453_v3 = vld [vmem:[%s1524_s7 + $0x28] sm:$0xff]  ;;  %v1115_v5 = vld [vmem:[%s1524_s7 + $0x38] sm:$0xff]  ;;  %v477_v6 = vadd.f32 %v461_v0, %v445_v62  ;;  %v728_v7 = vadd.f32 %v1123_v1, %v695_v63  ;;  %v430_v10 = vld [vmem:[%s1510_s1 + $0xc0] sm:$0xff] }
  0x3c   : > { %1089 = vmatmul.msk.f32.gmra.mxu2 %vm482_vm0, %v475_v34  ;;  %v469_v8 = vadd.f32 %v453_v3, %v437_v2  ;;  %v1108_v11 = vld [vmem:[%s1510_s1 + $0xd0] sm:$0xff]  ;;  %v720_v12 = vadd.f32 %v1115_v5, %v687_v4  ;;  %v402_v13 = vld [vmem:[%s1502_s2 + $0x20] sm:$0xff]  ;;  %v446_v16 = vadd.f32 %v430_v10, %v410_v9  ;;  %v411_v27 = vld [vmem:[%s1502_s2 + $0x68] sm:$0xff] }
  0x3d   : > { %v422_v14 = vld [vmem:[%s1510_s1 + $0x40] sm:$0xff]  ;;  %v1100_v15 = vld [vmem:[%s1510_s1 + $0x50] sm:$0xff]  ;;  %v696_v17 = vadd.f32 %v1108_v11, %v410_v9  ;;  %v431_v28 = vld [vmem:[%s1510_s1 + $0xc8] sm:$0xff] }
  0x3e   : > { %1129 = vmatmul.msk.f32.gmra.mxu1 %vm482_vm0, %v718_v40  ;;  %v462_v18 = vld [vmem:[%s1524_s7 + $0xc0] sm:$0xff]  ;;  %v1124_v19 = vld [vmem:[%s1524_s7 + $0xd0] sm:$0xff]  ;;  %v438_v20 = vadd.f32 %v422_v14, %v402_v13  ;;  %v688_v22 = vadd.f32 %v1100_v15, %v402_v13  ;;  %v1109_v29 = vld [vmem:[%s1510_s1 + $0xd8] sm:$0xff]  ;;  %v447_v34 = vadd.f32 %v431_v28, %v411_v27 }
  0x3f   : > { %1081 = vmatmul.msk.f32.gmra.mxu0 %vm482_vm0, %v467_v36  ;;  %v454_v21 = vld [vmem:[%s1524_s7 + $0x40] sm:$0xff]  ;;  %v1116_v23 = vld [vmem:[%s1524_s7 + $0x50] sm:$0xff]  ;;  %v478_v24 = vadd.f32 %v462_v18, %v446_v16  ;;  %v729_v25 = vadd.f32 %v1124_v19, %v696_v17  ;;  %v403_v31 = vld [vmem:[%s1502_s2 + $0x28] sm:$0xff]  ;;  %v697_v35 = vadd.f32 %v1109_v29, %v411_v27 }
  0x40   : > { %v470_v26 = vadd.f32 %v454_v21, %v438_v20  ;;  %v721_v30 = vadd.f32 %v1116_v23, %v688_v22  ;;  %v423_v32 = vld [vmem:[%s1510_s1 + $0x48] sm:$0xff]  ;;  %v1101_v33 = vld [vmem:[%s1510_s1 + $0x58] sm:$0xff]  ;;  %v412_v45 = vld [vmem:[%s1502_s2 + $0x70] sm:$0xff] }
  0x41   : > { %v463_v36 = vld [vmem:[%s1524_s7 + $0xc8] sm:$0xff]  ;;  %v1125_v37 = vld [vmem:[%s1524_s7 + $0xd8] sm:$0xff]  ;;  %v439_v38 = vadd.f32 %v423_v32, %v403_v31  ;;  %v689_v40 = vadd.f32 %v1101_v33, %v403_v31  ;;  %v432_v46 = vld [vmem:[%s1510_s1 + $0xe0] sm:$0xff] }
  0x42   : > { %v455_v39 = vld [vmem:[%s1524_s7 + $0x48] sm:$0xff]  ;;  %v1117_v41 = vld [vmem:[%s1524_s7 + $0x58] sm:$0xff]  ;;  %v479_v42 = vadd.f32 %v463_v36, %v447_v34  ;;  %v730_v43 = vadd.f32 %v1125_v37, %v697_v35  ;;  %v1110_v47 = vld [vmem:[%s1510_s1 + $0xf0] sm:$0xff] }
  0x43   : > { %1138 = vmatmul.msk.f32.gmra.mxu3 %vm482_vm0, %v727_v53  ;;  %v471_v44 = vadd.f32 %v455_v39, %v439_v38  ;;  %v722_v48 = vadd.f32 %v1117_v41, %v689_v40  ;;  %v404_v49 = vld [vmem:[%s1502_s2 + $0x30] sm:$0xff]  ;;  %v424_v50 = vld [vmem:[%s1510_s1 + $0x60] sm:$0xff]  ;;  %v698_v53 = vadd.f32 %v1110_v47, %v412_v45  ;;  %v413_v63 = vld [vmem:[%s1502_s2 + $0x78] sm:$0xff] }
  0x44   : > { %1090 = vmatmul.msk.f32.gmra.mxu2 %vm482_vm0, %v476_v52  ;;  %v1102_v51 = vld [vmem:[%s1510_s1 + $0x70] sm:$0xff]  ;;  %v448_v52 = vadd.f32 %v432_v46, %v412_v45  ;;  %v440_v56 = vadd.f32 %v424_v50, %v404_v49  ;;  %v456_v57 = vld [vmem:[%s1524_s7 + $0x60] sm:$0xff]  ;;  %v433_v0 = vld [vmem:[%s1510_s1 + $0xe8] sm:$0xff] }
  0x45   : > { %v1126_v55 = vld [vmem:[%s1524_s7 + $0xf0] sm:$0xff]  ;;  %v1111_v1 = vld [vmem:[%s1510_s1 + $0xf8] sm:$0xff]  ;;  %v425_v4 = vld [vmem:[%s1510_s1 + $0x68] sm:$0xff] }
  0x46   : > { %1130 = vmatmul.msk.f32.gmra.mxu1 %vm482_vm0, %v719_v58  ;;  %v690_v58 = vadd.f32 %v1102_v51, %v404_v49  ;;  %v1118_v59 = vld [vmem:[%s1524_s7 + $0x70] sm:$0xff]  ;;  %v731_v61 = vadd.f32 %v1126_v55, %v698_v53  ;;  %v472_v62 = vadd.f32 %v456_v57, %v440_v56  ;;  %v405_v3 = vld [vmem:[%s1502_s2 + $0x38] sm:$0xff]  ;;  %v457_v11 = vld [vmem:[%s1524_s7 + $0x68] sm:$0xff] }
  0x47   : > { %1082 = vmatmul.msk.f32.gmra.mxu0 %vm482_vm0, %v468_v54  ;;  %v464_v54 = vld [vmem:[%s1524_s7 + $0xe0] sm:$0xff]  ;;  %v1103_v5 = vld [vmem:[%s1510_s1 + $0x78] sm:$0xff]  ;;  %v441_v10 = vadd.f32 %v425_v4, %v405_v3 }
  0x48   : > { %v480_v60 = vadd.f32 %v464_v54, %v448_v52  ;;  %v723_v2 = vadd.f32 %v1118_v59, %v690_v58  ;;  %v1127_v9 = vld [vmem:[%s1524_s7 + $0xf8] sm:$0xff]  ;;  %v1641_v18 = vld [vmem:[%s1803_s4] ss:$0 sm:$0xff] }
  0x49   : > { %v1119_v13 = vld [vmem:[%s1524_s7 + $0x78] sm:$0xff]  ;;  %v473_v16 = vadd.f32 %v457_v11, %v441_v10  ;;  %v1646_v19 = vld [vmem:[%s1804_s5] ss:$0 sm:$0xff] }
  0x4b   : > { %1139 = vmatmul.msk.f32.gmra.mxu3 %vm482_vm0, %v728_v7  ;;  %v699_v7 = vadd.f32 %v1111_v1, %v413_v63 }
  0x4c   : > { %1091 = vmatmul.msk.f32.gmra.mxu2 %vm482_vm0, %v477_v6  ;;  %v449_v6 = vadd.f32 %v433_v0, %v413_v63 }
  0x4d   : > { %v732_v15 = vadd.f32 %v1127_v9, %v699_v7 }
  0x4e   : > { %1131 = vmatmul.msk.f32.gmra.mxu1 %vm482_vm0, %v720_v12  ;;  %v691_v12 = vadd.f32 %v1103_v5, %v405_v3 }
  0x4f   : > { %1083 = vmatmul.msk.f32.gmra.mxu0 %vm482_vm0, %v469_v8  ;;  %v465_v8 = vld [vmem:[%s1524_s7 + $0xe8] sm:$0xff] }
  0x50   : > { %v481_v14 = vadd.f32 %v465_v8, %v449_v6  ;;  %v724_v17 = vadd.f32 %v1119_v13, %v691_v12 }
  0x53   : > { %1140 = vmatmul.msk.f32.gmra.mxu3 %vm482_vm0, %v729_v25 }
  0x54   : > { %1092 = vmatmul.msk.f32.gmra.mxu2 %vm482_vm0, %v478_v24 }
  0x56   : > { %1132 = vmatmul.msk.f32.gmra.mxu1 %vm482_vm0, %v721_v30 }
  0x57   : > { %1084 = vmatmul.msk.f32.gmra.mxu0 %vm482_vm0, %v470_v26 }
  0x5b   : > { %1141 = vmatmul.msk.f32.gmra.mxu3 %vm482_vm0, %v730_v43 }
  0x5c   : > { %1093 = vmatmul.msk.f32.gmra.mxu2 %vm482_vm0, %v479_v42 }
  0x5e   : > { %1133 = vmatmul.msk.f32.gmra.mxu1 %vm482_vm0, %v722_v48 }
  0x5f   : > { %1085 = vmatmul.msk.f32.gmra.mxu0 %vm482_vm0, %v471_v44 }
  0x63   : > { %1142 = vmatmul.msk.f32.gmra.mxu3 %vm482_vm0, %v731_v61 }
  0x64   : > { %1094 = vmatmul.msk.f32.gmra.mxu2 %vm482_vm0, %v480_v60 }
  0x66   : > { %1134 = vmatmul.msk.f32.gmra.mxu1 %vm482_vm0, %v723_v2 }
  0x67   : > { %1086 = vmatmul.msk.f32.gmra.mxu0 %vm482_vm0, %v472_v62 }
  0x6b   : > { %1143 = vmatmul.msk.f32.gmra.mxu3 %vm482_vm0, %v732_v15 }
  0x6c   : > { %1095 = vmatmul.msk.f32.gmra.mxu2 %vm482_vm0, %v481_v14 }
  0x6e   : > { %1135 = vmatmul.msk.f32.gmra.mxu1 %vm482_vm0, %v724_v17 }
  0x6f   : > { %1087 = vmatmul.msk.f32.gmra.mxu0 %vm482_vm0, %v473_v16 }
  0xb3   : > { %v798_v22 = vpop.f32.mrf.mxu1 }
  0xb4   : > { %v548_v20 = vpop.f32.mrf.mxu0  ;;  %v846_v23 = vmul.f32 %v1641_v18, %v798_v22 }
  0xb5   : > { %v599_v21 = vmul.f32 %v1641_v18, %v548_v20 }
  0xb6   : > { %v862_v25 = vadd.f32 %v1646_v19, %v846_v23  ;;  %v822_v28 = vpop.f32.mrf.mxu3 }
  0xb7   : > { %v618_v24 = vadd.f32 %v1646_v19, %v599_v21  ;;  %v572_v27 = vpop.f32.mrf.mxu2  ;;  %v854_v31 = vmul.f32 %v1641_v18, %v822_v28 }
  0xb8   : > { %v607_v29 = vmul.f32 %v1641_v18, %v572_v27  ;;  %v878_v30 = vmax.f32 %v862_v25, 0.0 }
  0xb9   : > { %v634_v26 = vmax.f32 %v618_v24, 0.0  ;;  %v870_v33 = vadd.f32 %v1646_v19, %v854_v31 }
  0xba   : > { %v626_v32 = vadd.f32 %v1646_v19, %v607_v29  ;;  %1144 = vst.msk [vmem:[%s1654_s12 + $0x10] sm:$0xff] %vm650_vm1, %v878_v30 }
  0xbb   : > { %651 = vst.msk [vmem:[%s1654_s12] sm:$0xff] %vm650_vm1, %v634_v26  ;;  %v801_v36 = vpop.f32.mrf.mxu1  ;;  %v886_v38 = vmax.f32 %v870_v33, 0.0 }
  0xbc   : > { %v551_v34 = vpop.f32.mrf.mxu0  ;;  %v642_v37 = vmax.f32 %v626_v32, 0.0  ;;  %v847_v39 = vmul.f32 %v1641_v18, %v801_v36 }
  0xbd   : > { %v600_v35 = vmul.f32 %v1641_v18, %v551_v34  ;;  %1152 = vst.msk [vmem:[%s1654_s12 + $0x90] sm:$0xff] %vm650_vm1, %v886_v38 }
  0xbe   : > { %659 = vst.msk [vmem:[%s1654_s12 + $0x80] sm:$0xff] %vm650_vm1, %v642_v37  ;;  %v863_v41 = vadd.f32 %v1646_v19, %v847_v39  ;;  %v825_v44 = vpop.f32.mrf.mxu3 }
  0xbf   : > { %v619_v40 = vadd.f32 %v1646_v19, %v600_v35  ;;  %v575_v43 = vpop.f32.mrf.mxu2  ;;  %v855_v47 = vmul.f32 %v1641_v18, %v825_v44 }
  0xc0   : > { %v608_v45 = vmul.f32 %v1641_v18, %v575_v43  ;;  %v879_v46 = vmax.f32 %v863_v41, 0.0 }
  0xc1   : > { %v635_v42 = vmax.f32 %v619_v40, 0.0  ;;  %v871_v49 = vadd.f32 %v1646_v19, %v855_v47 }
  0xc2   : > { %v627_v48 = vadd.f32 %v1646_v19, %v608_v45  ;;  %1145 = vst.msk [vmem:[%s1654_s12 + $0x18] sm:$0xff] %vm650_vm1, %v879_v46 }
  0xc3   : > { %652 = vst.msk [vmem:[%s1654_s12 + $0x8] sm:$0xff] %vm650_vm1, %v635_v42  ;;  %v804_v52 = vpop.f32.mrf.mxu1  ;;  %v887_v54 = vmax.f32 %v871_v49, 0.0 }
  0xc4   : > { %v554_v50 = vpop.f32.mrf.mxu0  ;;  %v643_v53 = vmax.f32 %v627_v48, 0.0  ;;  %v848_v55 = vmul.f32 %v1641_v18, %v804_v52 }
  0xc5   : > { %v601_v51 = vmul.f32 %v1641_v18, %v554_v50  ;;  %1153 = vst.msk [vmem:[%s1654_s12 + $0x98] sm:$0xff] %vm650_vm1, %v887_v54 }
  0xc6   : > { %660 = vst.msk [vmem:[%s1654_s12 + $0x88] sm:$0xff] %vm650_vm1, %v643_v53  ;;  %v864_v57 = vadd.f32 %v1646_v19, %v848_v55  ;;  %v828_v60 = vpop.f32.mrf.mxu3 }
  0xc7   : > { %v620_v56 = vadd.f32 %v1646_v19, %v601_v51  ;;  %v578_v59 = vpop.f32.mrf.mxu2  ;;  %v856_v63 = vmul.f32 %v1641_v18, %v828_v60 }
  0xc8   : > { %v609_v61 = vmul.f32 %v1641_v18, %v578_v59  ;;  %v880_v62 = vmax.f32 %v864_v57, 0.0 }
  0xc9   : > { %v636_v58 = vmax.f32 %v620_v56, 0.0  ;;  %v872_v1 = vadd.f32 %v1646_v19, %v856_v63 }
  0xca   : > { %v628_v0 = vadd.f32 %v1646_v19, %v609_v61  ;;  %1146 = vst.msk [vmem:[%s1654_s12 + $0x30] sm:$0xff] %vm650_vm1, %v880_v62 }
  0xcb   : > { %653 = vst.msk [vmem:[%s1654_s12 + $0x20] sm:$0xff] %vm650_vm1, %v636_v58  ;;  %v807_v4 = vpop.f32.mrf.mxu1  ;;  %v888_v6 = vmax.f32 %v872_v1, 0.0 }
  0xcc   : > { %v557_v2 = vpop.f32.mrf.mxu0  ;;  %v644_v5 = vmax.f32 %v628_v0, 0.0  ;;  %v849_v7 = vmul.f32 %v1641_v18, %v807_v4 }
  0xcd   : > { %v602_v3 = vmul.f32 %v1641_v18, %v557_v2  ;;  %1154 = vst.msk [vmem:[%s1654_s12 + $0xb0] sm:$0xff] %vm650_vm1, %v888_v6 }
  0xce   : > { %661 = vst.msk [vmem:[%s1654_s12 + $0xa0] sm:$0xff] %vm650_vm1, %v644_v5  ;;  %v865_v9 = vadd.f32 %v1646_v19, %v849_v7  ;;  %v831_v12 = vpop.f32.mrf.mxu3 }
  0xcf   : > { %v621_v8 = vadd.f32 %v1646_v19, %v602_v3  ;;  %v581_v11 = vpop.f32.mrf.mxu2  ;;  %v857_v15 = vmul.f32 %v1641_v18, %v831_v12 }
  0xd0   : > { %v610_v13 = vmul.f32 %v1641_v18, %v581_v11  ;;  %v881_v14 = vmax.f32 %v865_v9, 0.0 }
  0xd1   : > { %v637_v10 = vmax.f32 %v621_v8, 0.0  ;;  %v873_v17 = vadd.f32 %v1646_v19, %v857_v15 }
  0xd2   : > { %v629_v16 = vadd.f32 %v1646_v19, %v610_v13  ;;  %1147 = vst.msk [vmem:[%s1654_s12 + $0x38] sm:$0xff] %vm650_vm1, %v881_v14 }
  0xd3   : > { %654 = vst.msk [vmem:[%s1654_s12 + $0x28] sm:$0xff] %vm650_vm1, %v637_v10  ;;  %v810_v22 = vpop.f32.mrf.mxu1  ;;  %v889_v24 = vmax.f32 %v873_v17, 0.0 }
  0xd4   : > { %v560_v20 = vpop.f32.mrf.mxu0  ;;  %v645_v23 = vmax.f32 %v629_v16, 0.0  ;;  %v850_v25 = vmul.f32 %v1641_v18, %v810_v22 }
  0xd5   : > { %v603_v21 = vmul.f32 %v1641_v18, %v560_v20  ;;  %1155 = vst.msk [vmem:[%s1654_s12 + $0xb8] sm:$0xff] %vm650_vm1, %v889_v24 }
  0xd6   : > { %662 = vst.msk [vmem:[%s1654_s12 + $0xa8] sm:$0xff] %vm650_vm1, %v645_v23  ;;  %v866_v27 = vadd.f32 %v1646_v19, %v850_v25  ;;  %v834_v30 = vpop.f32.mrf.mxu3 }
  0xd7   : > { %v622_v26 = vadd.f32 %v1646_v19, %v603_v21  ;;  %v584_v29 = vpop.f32.mrf.mxu2  ;;  %v858_v33 = vmul.f32 %v1641_v18, %v834_v30 }
  0xd8   : > { %v611_v31 = vmul.f32 %v1641_v18, %v584_v29  ;;  %v882_v32 = vmax.f32 %v866_v27, 0.0 }
  0xd9   : > { %v638_v28 = vmax.f32 %v622_v26, 0.0  ;;  %v874_v35 = vadd.f32 %v1646_v19, %v858_v33 }
  0xda   : > { %v630_v34 = vadd.f32 %v1646_v19, %v611_v31  ;;  %1148 = vst.msk [vmem:[%s1654_s12 + $0x50] sm:$0xff] %vm650_vm1, %v882_v32 }
  0xdb   : > { %655 = vst.msk [vmem:[%s1654_s12 + $0x40] sm:$0xff] %vm650_vm1, %v638_v28  ;;  %v813_v38 = vpop.f32.mrf.mxu1  ;;  %v890_v40 = vmax.f32 %v874_v35, 0.0 }
  0xdc   : > { %v563_v36 = vpop.f32.mrf.mxu0  ;;  %v646_v39 = vmax.f32 %v630_v34, 0.0  ;;  %v851_v41 = vmul.f32 %v1641_v18, %v813_v38 }
  0xdd   : > { %v604_v37 = vmul.f32 %v1641_v18, %v563_v36  ;;  %1156 = vst.msk [vmem:[%s1654_s12 + $0xd0] sm:$0xff] %vm650_vm1, %v890_v40 }
  0xde   : > { %663 = vst.msk [vmem:[%s1654_s12 + $0xc0] sm:$0xff] %vm650_vm1, %v646_v39  ;;  %v867_v43 = vadd.f32 %v1646_v19, %v851_v41  ;;  %v837_v46 = vpop.f32.mrf.mxu3 }
  0xdf   : > { %v623_v42 = vadd.f32 %v1646_v19, %v604_v37  ;;  %v587_v45 = vpop.f32.mrf.mxu2  ;;  %v859_v49 = vmul.f32 %v1641_v18, %v837_v46 }
  0xe0   : > { %v612_v47 = vmul.f32 %v1641_v18, %v587_v45  ;;  %v883_v48 = vmax.f32 %v867_v43, 0.0 }
  0xe1   : > { %v639_v44 = vmax.f32 %v623_v42, 0.0  ;;  %v875_v51 = vadd.f32 %v1646_v19, %v859_v49 }
  0xe2   : > { %v631_v50 = vadd.f32 %v1646_v19, %v612_v47  ;;  %1149 = vst.msk [vmem:[%s1654_s12 + $0x58] sm:$0xff] %vm650_vm1, %v883_v48 }
  0xe3   : > { %656 = vst.msk [vmem:[%s1654_s12 + $0x48] sm:$0xff] %vm650_vm1, %v639_v44  ;;  %v816_v54 = vpop.f32.mrf.mxu1  ;;  %v891_v56 = vmax.f32 %v875_v51, 0.0 }
  0xe4   : > { %v566_v52 = vpop.f32.mrf.mxu0  ;;  %v647_v55 = vmax.f32 %v631_v50, 0.0  ;;  %v852_v57 = vmul.f32 %v1641_v18, %v816_v54 }
  0xe5   : > { %v605_v53 = vmul.f32 %v1641_v18, %v566_v52  ;;  %1157 = vst.msk [vmem:[%s1654_s12 + $0xd8] sm:$0xff] %vm650_vm1, %v891_v56 }
  0xe6   : > { %664 = vst.msk [vmem:[%s1654_s12 + $0xc8] sm:$0xff] %vm650_vm1, %v647_v55  ;;  %v868_v59 = vadd.f32 %v1646_v19, %v852_v57  ;;  %v840_v62 = vpop.f32.mrf.mxu3 }
  0xe7   : > { %v624_v58 = vadd.f32 %v1646_v19, %v605_v53  ;;  %v590_v61 = vpop.f32.mrf.mxu2  ;;  %v860_v1 = vmul.f32 %v1641_v18, %v840_v62 }
  0xe8   : > { %v613_v63 = vmul.f32 %v1641_v18, %v590_v61  ;;  %v884_v0 = vmax.f32 %v868_v59, 0.0 }
  0xe9   : > { %v640_v60 = vmax.f32 %v624_v58, 0.0  ;;  %v876_v3 = vadd.f32 %v1646_v19, %v860_v1 }
  0xea   : > { %v632_v2 = vadd.f32 %v1646_v19, %v613_v63  ;;  %1150 = vst.msk [vmem:[%s1654_s12 + $0x70] sm:$0xff] %vm650_vm1, %v884_v0 }
  0xeb   : > { %657 = vst.msk [vmem:[%s1654_s12 + $0x60] sm:$0xff] %vm650_vm1, %v640_v60  ;;  %v819_v6 = vpop.f32.mrf.mxu1  ;;  %v892_v8 = vmax.f32 %v876_v3, 0.0 }
  0xec   : > { %v569_v4 = vpop.f32.mrf.mxu0  ;;  %v648_v7 = vmax.f32 %v632_v2, 0.0  ;;  %v853_v9 = vmul.f32 %v1641_v18, %v819_v6 }
  0xed   : > { %v606_v5 = vmul.f32 %v1641_v18, %v569_v4  ;;  %1158 = vst.msk [vmem:[%s1654_s12 + $0xf0] sm:$0xff] %vm650_vm1, %v892_v8 }
  0xee   : > { %665 = vst.msk [vmem:[%s1654_s12 + $0xe0] sm:$0xff] %vm650_vm1, %v648_v7  ;;  %v869_v11 = vadd.f32 %v1646_v19, %v853_v9  ;;  %v843_v14 = vpop.f32.mrf.mxu3 }
  0xef   : > { %v625_v10 = vadd.f32 %v1646_v19, %v606_v5  ;;  %v593_v13 = vpop.f32.mrf.mxu2  ;;  %v861_v17 = vmul.f32 %v1641_v18, %v843_v14 }
  0xf0   : > { %v614_v15 = vmul.f32 %v1641_v18, %v593_v13  ;;  %v885_v16 = vmax.f32 %v869_v11, 0.0 }
  0xf1   : > { %v641_v12 = vmax.f32 %v625_v10, 0.0  ;;  %v877_v21 = vadd.f32 %v1646_v19, %v861_v17 }
  0xf2   : > { %v633_v20 = vadd.f32 %v1646_v19, %v614_v15  ;;  %1151 = vst.msk [vmem:[%s1654_s12 + $0x78] sm:$0xff] %vm650_vm1, %v885_v16 }
  0xf3   : > { %658 = vst.msk [vmem:[%s1654_s12 + $0x68] sm:$0xff] %vm650_vm1, %v641_v12  ;;  %v893_v23 = vmax.f32 %v877_v21, 0.0 }
  0xf4   : > { %v649_v22 = vmax.f32 %v633_v20, 0.0 }
  0xf5   : > { %1159 = vst.msk [vmem:[%s1654_s12 + $0xf8] sm:$0xff] %vm650_vm1, %v893_v23 }
  0xf6   : > { %666 = vst.msk [vmem:[%s1654_s12 + $0xe8] sm:$0xff] %vm650_vm1, %v649_v22 }
  0xf7 PF: > { %s22_s26 = sadd.s32 1, %s1383_s26   ;;  %s1817_s24 = sld [smem:[#allocation10_spill]] }
  0xf8   : > { %p19_p0 = scmp.ge.s32.totalorder %s22_s26, 4   ;;  %s1818_s28 = sld [smem:[#allocation9_spill]] }
  0xf9   : > { %s1819_s21 = smov %s1367_s22  ;;  %s1820_s22 = smov %s1371_s23 }
  0xfa   :  { %21 = sbr.rel (!%p19_p0) target bundleno = 9 (0x9), region = 111 }
  0xfd   : > { %s1821_s23 = smov %s1817_s24  ;;  %s1822_s24 = smov %s1379_s25 }
  0xfe   : > { %s1823_s25 = smov %s1818_s28 }
  0xff   :  { %943 = vsyncpa [#allocation3], 1 }
 0x100   :  { %945 = vsyncpa [#allocation3 + $0x1], 1 }
 0x101   :  { %946 = vsyncpa [#allocation5], 1 }
 0x102   :  { %948 = vsyncpa [#allocation5 + $0x1], 1 }

</bundles_post_ra>
